<compile_context>
chip_gen: v7x
topology: tpu7x:2x2x1
jax: 0.10.0
libtpu: 0.0.40
codegen_flags: <defaults>
</compile_context>

<pallas_src>
import functools

import jax
import jax.numpy as jnp
import numpy as np
from jax import lax
from jax.experimental import pallas as pl
from jax.experimental.pallas import tpu as pltpu


def _round_up(x, m):
    return (x + m - 1) // m * m


def feature_l2_norm(feature, axis=1, eps=1e-6):
    """Plain JAX featureL2Norm (elementwise; not worth a Pallas kernel)."""
    norm = jnp.sqrt(jnp.sum(feature * feature, axis=axis, keepdims=True) + eps)
    return feature / norm


def _corr_kernel(lhs_ref, rhs_ref, out_ref, *, compute_dtype):
    """out[m, n] = relu(sum_c lhs[c, m] * rhs[c, n]).

    lhs_ref: (c, TM) tile of A features, rhs_ref: (c, TN) tile of B features,
    out_ref: (TM, TN) tile.  Inputs arrive in f32 and are cast to the compute
    dtype in-register (no wrapper-side convert/pad round trip).  Contracting
    dim 0 keeps the (possibly ragged) hw axes on lanes; ragged edge reads only
    affect output rows/cols that the masked writeback drops.
    """
    lhs = lhs_ref[...].astype(compute_dtype)
    rhs = rhs_ref[...].astype(compute_dtype)
    # TODO(synk): if a bundle dump shows an XLU transpose feeding the MXU here
    # at c=512, switch lhs to (M, K) layout in the wrapper (fold into the 3D
    # branch transpose) and use standard (M,K)x(K,N) dimension_numbers.
    acc = lax.dot_general(
        lhs, rhs,
        dimension_numbers=(((0,), (0,)), ((), ())),
        preferred_element_type=jnp.float32,
    )
    out_ref[...] = jnp.maximum(acc, 0.0).astype(out_ref.dtype)


def _choose_tiles(b, c_k, hw, vmem_budget=24 * 1024 * 1024):
    """Pick output tile sizes (tm, tn).

    Preference: (a) keep the whole N extent resident so rhs is DMA'd once per
    batch, (b) keep >=2 grid steps along a parallel axis so both v7x
    TensorCores get work even at b==1, (c) stay within a VMEM budget that is
    safe on the 64 MiB v7x chip (v5e/v6e have far more headroom).
    """
    def vmem_bytes(tm, tn):
        lanes_m = _round_up(tm, 128)
        lanes_n = _round_up(tn, 128)
        c_sub = _round_up(c_k, 8)
        per_step = 4 * (c_sub * lanes_m + c_sub * lanes_n + lanes_m * lanes_n)
        return 2 * per_step  # double-buffered

    if hw <= 256:
        tm = 128          # real-model hw=225 -> 2 mi steps (megacore-friendly)
    elif hw <= 1024:
        tm = 256
    else:
        tm = 512

    if vmem_bytes(tm, hw) <= vmem_budget:
        tn = hw           # full-row residency: rhs fetched once per batch
    elif vmem_bytes(tm, 512) <= vmem_budget:
        tn = 512
    else:
        tn = 256
    return tm, tn


def _correlation_matmul_relu(lhs, rhs, compute_dtype, out_dtype):
    """lhs, rhs: (b, c, hw) f32.  Returns relu(lhs^T @ rhs) per batch: (b, hw, hw)."""
    b, c, hw = lhs.shape
    assert rhs.shape == (b, c, hw)

    # Zero-pad ONLY the contraction axis, and only when it is not already a
    # sublane multiple (c=512 in the real model needs no pad).  hw is never
    # padded: the output is emitted unpadded and edge blocks use masked writes.
    c_k = _round_up(c, 8)
    if c_k != c:
        pad = ((0, 0), (0, c_k - c), (0, 0))
        lhs = jnp.pad(lhs, pad)
        rhs = jnp.pad(rhs, pad)

    tm, tn = _choose_tiles(b, c_k, hw)
    grid = (b, pl.cdiv(hw, tm), pl.cdiv(hw, tn))

    out_bytes = b * hw * hw * np.dtype(out_dtype).itemsize
    cost = pl.CostEstimate(
        flops=2 * b * c * hw * hw,
        transcendentals=0,
        bytes_accessed=2 * b * c_k * hw * 4 + out_bytes,
    )

    kernel = functools.partial(_corr_kernel, compute_dtype=compute_dtype)
    # TODO(synk): for very large c (>~4096) add a K grid axis ("arbitrary") with
    # a VMEM accumulator; for many small batches, folding several batches per
    # grid step would further amortize the ~0.35us/step overhead.
    out = pl.pallas_call(
        kernel,
        out_shape=jax.ShapeDtypeStruct((b, hw, hw), out_dtype),
        grid=grid,
        in_specs=[
            pl.BlockSpec((pl.Squeezed(), c_k, tm), lambda bi, mi, ni: (bi, 0, mi)),
            pl.BlockSpec((pl.Squeezed(), c_k, tn), lambda bi, mi, ni: (bi, 0, ni)),
        ],
        out_specs=pl.BlockSpec(
            (pl.Squeezed(), tm, tn), lambda bi, mi, ni: (bi, mi, ni)
        ),
        compiler_params=pltpu.CompilerParams(
            dimension_semantics=("parallel", "parallel", "parallel"),
            vmem_limit_bytes=48 * 1024 * 1024,   # safe on v7x (64 MiB VMEM)
        ),
        cost_estimate=cost,
    )(lhs, rhs)
    return out


@functools.partial(jax.jit, static_argnames=("shape", "compute_dtype", "out_dtype"))
def feature_correlation(feature_A, feature_B, shape="3D",
                        compute_dtype=jnp.bfloat16, out_dtype=jnp.float32):
    """Forward pass of FeatureCorrelation (the normalization branch is dead code
    in the reference module; only bmm + ReLU are live).

    out_dtype=jnp.bfloat16 halves output HBM traffic (biggest lever on v5e) if
    the downstream FeatureRegression tolerates it; default stays f32 to match
    the PyTorch semantics.
    """
    b, c, h, w = feature_A.shape
    hw = h * w
    fA = feature_A.astype(jnp.float32)
    fB = feature_B.astype(jnp.float32)
    if shape == "3D":
        # feature_A.transpose(2,3).contiguous().view(b,c,h*w): idx_A = wA*h + hA
        lhs = jnp.transpose(fA, (0, 1, 3, 2)).reshape(b, c, hw)
        # feature_B.view(b,c,h*w): idx_B = hB*w + wB
        rhs = fB.reshape(b, c, hw)
        # Kernel output is already (b, idx_A, idx_B) == the layout after the
        # PyTorch view/transpose chain; only a free reshape remains.
        mul = _correlation_matmul_relu(lhs, rhs, compute_dtype, out_dtype)
        return mul.reshape(b, hw, h, w)
    elif shape == "4D":
        lhs = fA.reshape(b, c, hw)   # idx_A = hA*w + wA
        rhs = fB.reshape(b, c, hw)   # idx_B = hB*w + wB
        mul = _correlation_matmul_relu(lhs, rhs, compute_dtype, out_dtype)
        return mul.reshape(b, 1, h, w, h, w)
    else:
        raise ValueError(f"unknown shape mode: {shape}")


def _reference_3d(feature_A, feature_B):
    # ref[b, wA*h + hA, hB, wB] = relu(sum_c fA[b,c,hA,wA] * fB[b,c,hB,wB])
    b, c, h, w = feature_A.shape
    e = jnp.einsum("bcij,bckl->bjikl", feature_A, feature_B)  # (b, w, h, h, w)
    return jnp.maximum(e.reshape(b, h * w, h, w), 0.0)


def _reference_4d(feature_A, feature_B):
    b, c, h, w = feature_A.shape
    e = jnp.einsum("bcij,bckl->bijkl", feature_A, feature_B)  # (b, h, w, h, w)
    return jnp.maximum(e.reshape(b, 1, h, w, h, w), 0.0)


def _quantize_bf16(x):
    return x.astype(jnp.bfloat16).astype(jnp.float32)


if __name__ == "__main__":
    key = jax.random.PRNGKey(0)
    ka, kb = jax.random.split(key)
    b, c, h, w = 2, 4, 16, 16
    feature_A = jax.random.normal(ka, (b, c, h, w), dtype=jnp.float32)
    feature_B = jax.random.normal(kb, (b, c, h, w), dtype=jnp.float32)

    # Kernel computes in bf16 with f32 accumulation; compare against the
    # reference evaluated on the same bf16-quantized inputs.
    fA_q = _quantize_bf16(feature_A)
    fB_q = _quantize_bf16(feature_B)

    out3 = jax.block_until_ready(feature_correlation(feature_A, feature_B, shape="3D"))
    ref3 = _reference_3d(fA_q, fB_q)
    np.testing.assert_allclose(np.asarray(out3), np.asarray(ref3),
                               rtol=1e-4, atol=1e-4)
    assert out3.shape == (b, h * w, h, w)

    out4 = jax.block_until_ready(feature_correlation(feature_A, feature_B, shape="4D"))
    ref4 = _reference_4d(fA_q, fB_q)
    np.testing.assert_allclose(np.asarray(out4), np.asarray(ref4),
                               rtol=1e-4, atol=1e-4)
    assert out4.shape == (b, 1, h, w, h, w)

    # Also exercise the non-128-multiple spatial size used by the real model
    # (15x15 feature maps -> hw = 225): unpadded output, ragged edge blocks.
    h2 = w2 = 15
    kc, kd = jax.random.split(kb)
    fA2 = jax.random.normal(kc, (b, c, h2, w2), dtype=jnp.float32)
    fB2 = jax.random.normal(kd, (b, c, h2, w2), dtype=jnp.float32)
    out3b = jax.block_until_ready(feature_correlation(fA2, fB2, shape="3D"))
    ref3b = _reference_3d(_quantize_bf16(fA2), _quantize_bf16(fB2))
    np.testing.assert_allclose(np.asarray(out3b), np.asarray(ref3b),
                               rtol=1e-4, atol=1e-4)
    assert out3b.shape == (b, h2 * w2, h2, w2)

    print("KERNEL_OK")
</pallas_src>

<mosaic_0001>
module attributes {stable_mosaic.version = 11 : i64} {
  func.func @_corr_kernel(%arg0: i32, %arg1: i32, %arg2: i32, %arg3: memref<1x8x128xf32, #tpu.memory_space<vmem>>, %arg4: memref<1x8x256xf32, #tpu.memory_space<vmem>>, %arg5: memref<1x128x256xf32, #tpu.memory_space<vmem>>) attributes {dimension_semantics = [#tpu.dimension_semantics<parallel>, #tpu.dimension_semantics<parallel>, #tpu.dimension_semantics<parallel>], iteration_bounds = array<i64: 2, 2, 1>, scalar_prefetch = 0 : i64, scratch_operands = 0 : i64, tpu.core_type = #tpu.core_type<tc>, window_params = [{transform_indices = @transform_0, window_bounds = array<i64: 1, 8, 128>}, {transform_indices = @transform_1, window_bounds = array<i64: 1, 8, 256>}, {transform_indices = @transform_2, window_bounds = array<i64: 1, 128, 256>}]} {
    %c0 = arith.constant 0 : index
    %c0_0 = arith.constant 0 : index
    %c0_1 = arith.constant 0 : index
    %0 = vector.load %arg3[%c0, %c0_0, %c0_1] : memref<1x8x128xf32, #tpu.memory_space<vmem>>, vector<1x8x128xf32>
    %1 = vector.shape_cast %0 : vector<1x8x128xf32> to vector<8x128xf32>
    %2 = arith.truncf %1 : vector<8x128xf32> to vector<8x128xbf16>
    %c0_2 = arith.constant 0 : index
    %c0_3 = arith.constant 0 : index
    %c0_4 = arith.constant 0 : index
    %3 = vector.load %arg4[%c0_2, %c0_3, %c0_4] : memref<1x8x256xf32, #tpu.memory_space<vmem>>, vector<1x8x256xf32>
    %4 = vector.shape_cast %3 : vector<1x8x256xf32> to vector<8x256xf32>
    %5 = arith.truncf %4 : vector<8x256xf32> to vector<8x256xbf16>
    %cst = arith.constant dense<0.000000e+00> : vector<128x256xf32>
    %6 = tpu.matmul %2, %5, %cst {dimension_numbers = #tpu.dot_dimension_numbers<[0], [0], [1], [1], [0, 1, 1, 1], [], []>} : vector<8x128xbf16>, vector<8x256xbf16>, vector<128x256xf32> -> vector<128x256xf32>
    %cst_5 = arith.constant 0.000000e+00 : f32
    %7 = vector.broadcast %cst_5 : f32 to vector<128x256xf32>
    %8 = arith.maximumf %6, %7 : vector<128x256xf32>
    %c0_6 = arith.constant 0 : index
    %c0_7 = arith.constant 0 : index
    %c0_8 = arith.constant 0 : index
    %9 = vector.load %arg5[%c0_6, %c0_7, %c0_8] : memref<1x128x256xf32, #tpu.memory_space<vmem>>, vector<1x128x256xf32>
    %10 = vector.shape_cast %9 : vector<1x128x256xf32> to vector<128x256xf32>
    %11 = vector.shape_cast %8 : vector<128x256xf32> to vector<1x128x256xf32>
    tpu.vector_store %arg5[%c0_6, %c0_7, %c0_8], %11 {strides = array<i32>} : memref<1x128x256xf32, #tpu.memory_space<vmem>>, vector<1x128x256xf32>,
    return
  }
  func.func @transform_0(%arg0: i32, %arg1: i32, %arg2: i32) -> (i32, i32, i32) {
    %c0_i32 = arith.constant 0 : i32
    %c0_i32_0 = arith.constant 0 : i32
    return %arg0, %c0_i32, %arg1 : i32, i32, i32
  }
  func.func @transform_1(%arg0: i32, %arg1: i32, %arg2: i32) -> (i32, i32, i32) {
    %c0_i32 = arith.constant 0 : i32
    %c0_i32_0 = arith.constant 0 : i32
    return %arg0, %c0_i32, %arg2 : i32, i32, i32
  }
  func.func @transform_2(%arg0: i32, %arg1: i32, %arg2: i32) -> (i32, i32, i32) {
    %c0_i32 = arith.constant 0 : i32
    return %arg0, %arg1, %arg2 : i32, i32, i32
  }
}

</mosaic_0001>

<bundles_post_ra>
// kernel: feature_correlation.1
= control target key start
LH: loop header
LB: loop body
LE: loop exit
PB: predicated region body
PF: predicated region fallthrough
CT: control target
= control target key end

     0   :  { %s720_s9 = smov 0   ;;  %s722_s10 = smov 0   ;;  %s826_s0 = inlined_call_operand.vmem [shape: f32[2,8,256], index: 0, kind: input, shape index: {}]   ;;  %s827_s1 = inlined_call_operand.vmem [shape: f32[2,8,256], index: 1, kind: input, shape index: {}]   ;;  %s828_s2 = inlined_call_operand.vmem [shape: f32[2,256,256], index: 2, kind: output, shape index: {}]  }
   0x1   :  { %s724_s11 = smov 0   ;;  %s726_s12 = smov 0  }
   0x2   :  { %s728_s13 = smov 0  }
   0x3 LB: > { %s27_s14 = sadd.s32 1, %s694_s11  ;;  %s31_s15 = sadd.s32 1, %s698_s12  ;;  %s702_s13 = sphi %s728_s13, %s12_s13   ;;  %s698_s12 = sphi %s726_s12, %s832_s12   ;;  %s694_s11 = sphi %s724_s11, %s831_s11   ;;  %s690_s10 = sphi %s722_s10, %s830_s10   ;;  %s686_s9 = sphi %s720_s9, %s829_s9  }
   0x4   : > { %p29_p0 = scmp.ge.s32.totalorder %s27_s14, 2  ;;  %p600_p1 = scmp.ge.s32.totalorder %s702_s13, 1 }
   0x5   : > { %p157_p2 = scmp.lt.s32.totalorder %s702_s13, 5 }
   0x6   : > { %s834_s14 = smov (%p29_p0, %s27_s14), 0  ;;  %s836_s15 = smov (!%p29_p0, %s31_s15), %s698_s12 }
   0x7   : > { %p158_p3 = pnand %p600_p1, %p157_p2  ;;  %p33_p4 = scmp.ge.s32.totalorder %s836_s15, 2 }
   0x8   : > { %p200_p5 = scmp.lt.s32.totalorder (!%p158_p3), %s690_s10, 1  ;;  %p202_p6 = scmp.lt.s32.totalorder (!%p158_p3), %s686_s9, 1  ;;  %v704_v0 = vmov (!%p158_p3), 0   ;;  %vm282_vm0 = vcmask (!%p158_p3), 1043456   ;;  %vm257_vm1 = vcmask (!%p158_p3), 64512  }
   0x9   : > { %s838_s15 = smov (%p33_p4, %s836_s15), 0  ;;  %161 = sbr.rel (%p158_p3) target bundleno = 386 (0x182), region = 28 }
   0xa   : > { %321 = vmatprep.mubr.bf16.mxu0 (!%p158_p3), %v704_v0  ;;  %361 = vmatprep.mubr.bf16.mxu1 (!%p158_p3), %v704_v0  ;;  %s605_s27 = sshll.u32 (!%p158_p3), %s686_s9, 4 }
   0xb   : > { %p222_p7 = scmp.lt.s32.totalorder (!%p158_p3), %s605_s27, 31 }
  0x10   : > { %s840_s10 = smov (!%p200_p5, %s690_s10), 1  ;;  %s842_s27 = smov (!%p222_p7, %s605_s27), 31 }
  0x11   : > { %s203_s16 = scalar_select %p202_p6, %s686_s9, 1 }
  0x12   : > { %s601_s17 = sshll.u32 %s840_s10, 1  ;;  %s620_s20 = sshll.u32 %s840_s10, 4 }
  0x13   : > { %s205_s18 = sadd.s32 %s601_s17, %s203_s16  ;;  %s216_s26 = scalar_lea.vmem %s827_s1, %s620_s20 }
  0x14   : > { %s602_s19 = sshll.u32 %s205_s18, 3  ;;  %v238_v2 = vld [vmem:[%s216_s26 + $0x8] sm:$0xff]  ;;  %v237_v3 = vld [vmem:[%s216_s26] sm:$0xff]  ;;  %s606_s28 = sshll.u32 %s842_s27, 1 }
  0x15   : > { %s207_s23 = scalar_lea.vmem %s826_s0, %s602_s19  ;;  %v240_v5 = vpack.c.bf16 %v238_v2, %v238_v2  ;;  %v239_v6 = vpack.c.bf16 %v237_v3, %v237_v3  ;;  %s607_s29 = sshll.u32 %s840_s10, 6 }
  0x16   : > { %v235_v1 = vld [vmem:[%s207_s23] sm:$0xff]  ;;  %s229_s30 = sadd.s32 %s607_s29, %s606_s28 }
  0x17   : > { %v236_v4 = vpack.c.bf16 %v235_v1, %v235_v1  ;;  %609 = vmatprep.subr.msk.bf16.mxu0 %vm282_vm0, %v240_v5  ;;  %v284_v7 = vsel %vm282_vm0, %v239_v6, 0  ;;  %621 = vmatprep.subr.msk.bf16.mxu1 %vm282_vm0, %v240_v5  ;;  %s608_s3 = sshll.u32 %s229_s30, 3 }
  0x18   : > { %290 = vmatpush1.bf16.msra.mxu0 %v284_v7  ;;  %622 = vmatpush1.bf16.msra.mxu1 %v284_v7  ;;  %s777_s6 = scalar_lea.vmem %s828_s2, %s608_s3 }
  0x19   : > { %241 = vxpose.xlu0.c.b16.start.end [1/1] (short) %v236_v4, 128 }
  0x7f   : > { %v249_v8 = vpop.trf.xlu0 }
  0x80   : > { %610 = vmatmul.mubr.msk.bf16.vlgmr.msra.gmra.mrb[0].mxu0 %vm257_vm1, %v249_v8 }
  0x81   : > { %331 = vmatprep.mubr.bf16.mxu0 %v704_v0 }
  0x83   : > { %v250_v9 = vpop.trf.xlu0 }
  0x87   : > { %v251_v10 = vpop.trf.xlu0 }
  0x88   : > { %611 = vmatmul.mubr.msk.bf16.gmra.mrb[4].mxu0 %vm257_vm1, %v250_v9 }
  0x89   : > { %341 = vmatprep.mubr.bf16.mxu0 %v704_v0 }
  0x8b   : > { %v252_v11 = vpop.trf.xlu0 }
  0x8f   : > { %v253_v12 = vpop.trf.xlu0 }
  0x90   : > { %612 = vmatmul.mubr.msk.bf16.gmra.mrb[8].mxu0 %vm257_vm1, %v251_v10  ;;  %614 = vmatmul.mubr.msk.bf16.vlgmr.msra.gmra.mrb[0].mxu1 %vm257_vm1, %v253_v12 }
  0x91   : > { %351 = vmatprep.mubr.bf16.mxu0 %v704_v0  ;;  %371 = vmatprep.mubr.bf16.mxu1 %v704_v0 }
  0x93   : > { %v254_v13 = vpop.trf.xlu0 }
  0x97   : > { %v255_v14 = vpop.trf.xlu0 }
  0x98   : > { %613 = vmatmul.mubr.msk.bf16.gmra.mrb[12].mxu0 %vm257_vm1, %v252_v11  ;;  %615 = vmatmul.mubr.msk.bf16.gmra.mrb[4].mxu1 %vm257_vm1, %v254_v13 }
  0x99   : > { %381 = vmatprep.mubr.bf16.mxu1 %v704_v0 }
  0x9b   : > { %v256_v15 = vpop.trf.xlu0 }
  0xa0   : > { %616 = vmatmul.mubr.msk.bf16.gmra.mrb[8].mxu1 %vm257_vm1, %v255_v14 }
  0xa1   : > { %391 = vmatprep.mubr.bf16.mxu1 %v704_v0 }
  0xa8   : > { %617 = vmatmul.mubr.msk.bf16.gmra.mrb[12].mxu1 %vm257_vm1, %v256_v15 }
 0x153   : > { %v323_v16 = vpop.f32.mrb[0].mxu0 }
 0x154   : > { %v402_v17 = vmax.f32 %v323_v16, 0.0  ;;  %v325_v18 = vpop.f32.mrb[1].mxu0 }
 0x155   : > { %v403_v19 = vmax.f32 %v325_v18, 0.0  ;;  %v327_v20 = vpop.f32.mrb[2].mxu0 }
 0x156   : > { %434 = vst [vmem:[%s777_s6] sm:$0xff] %v402_v17  ;;  %v404_v21 = vmax.f32 %v327_v20, 0.0  ;;  %v329_v22 = vpop.f32.mrb[3].mxu0 }
 0x157   : > { %435 = vst [vmem:[%s777_s6 + $0x8] sm:$0xff] %v403_v19  ;;  %v405_v23 = vmax.f32 %v329_v22, 0.0 }
 0x158   : > { %436 = vst [vmem:[%s777_s6 + $0x10] sm:$0xff] %v404_v21 }
 0x159   : > { %437 = vst [vmem:[%s777_s6 + $0x18] sm:$0xff] %v405_v23 }
 0x15b   : > { %v333_v24 = vpop.f32.mrb[4].mxu0 }
 0x15c   : > { %v406_v25 = vmax.f32 %v333_v24, 0.0  ;;  %v335_v26 = vpop.f32.mrb[5].mxu0 }
 0x15d   : > { %v407_v27 = vmax.f32 %v335_v26, 0.0  ;;  %v337_v28 = vpop.f32.mrb[6].mxu0 }
 0x15e   : > { %438 = vst [vmem:[%s777_s6 + $0x20] sm:$0xff] %v406_v25  ;;  %v408_v29 = vmax.f32 %v337_v28, 0.0  ;;  %v339_v30 = vpop.f32.mrb[7].mxu0 }
 0x15f   : > { %439 = vst [vmem:[%s777_s6 + $0x28] sm:$0xff] %v407_v27  ;;  %v409_v31 = vmax.f32 %v339_v30, 0.0 }
 0x160   : > { %440 = vst [vmem:[%s777_s6 + $0x30] sm:$0xff] %v408_v29 }
 0x161   : > { %441 = vst [vmem:[%s777_s6 + $0x38] sm:$0xff] %v409_v31 }
 0x163   : > { %v343_v32 = vpop.f32.mrb[8].mxu0  ;;  %v363_v33 = vpop.f32.mrb[0].mxu1 }
 0x164   : > { %v410_v34 = vmax.f32 %v343_v32, 0.0  ;;  %v418_v35 = vmax.f32 %v363_v33, 0.0  ;;  %v345_v36 = vpop.f32.mrb[9].mxu0  ;;  %v365_v37 = vpop.f32.mrb[1].mxu1 }
 0x165   : > { %v411_v38 = vmax.f32 %v345_v36, 0.0  ;;  %v419_v39 = vmax.f32 %v365_v37, 0.0  ;;  %v347_v40 = vpop.f32.mrb[10].mxu0  ;;  %v367_v41 = vpop.f32.mrb[2].mxu1 }
 0x166   : > { %442 = vst [vmem:[%s777_s6 + $0x40] sm:$0xff] %v410_v34  ;;  %450 = vst [vmem:[%s777_s6 + $0x80] sm:$0xff] %v418_v35  ;;  %v412_v42 = vmax.f32 %v347_v40, 0.0  ;;  %v420_v43 = vmax.f32 %v367_v41, 0.0  ;;  %v349_v44 = vpop.f32.mrb[11].mxu0  ;;  %v369_v45 = vpop.f32.mrb[3].mxu1 }
 0x167   : > { %443 = vst [vmem:[%s777_s6 + $0x48] sm:$0xff] %v411_v38  ;;  %451 = vst [vmem:[%s777_s6 + $0x88] sm:$0xff] %v419_v39  ;;  %v413_v46 = vmax.f32 %v349_v44, 0.0  ;;  %v421_v47 = vmax.f32 %v369_v45, 0.0 }
 0x168   : > { %444 = vst [vmem:[%s777_s6 + $0x50] sm:$0xff] %v412_v42  ;;  %452 = vst [vmem:[%s777_s6 + $0x90] sm:$0xff] %v420_v43 }
 0x169   : > { %445 = vst [vmem:[%s777_s6 + $0x58] sm:$0xff] %v413_v46  ;;  %453 = vst [vmem:[%s777_s6 + $0x98] sm:$0xff] %v421_v47 }
 0x16b   : > { %v353_v48 = vpop.f32.mrb[12].mxu0  ;;  %v373_v49 = vpop.f32.mrb[4].mxu1 }
 0x16c   : > { %v414_v50 = vmax.f32 %v353_v48, 0.0  ;;  %v422_v51 = vmax.f32 %v373_v49, 0.0  ;;  %v355_v52 = vpop.f32.mrb[13].mxu0  ;;  %v375_v53 = vpop.f32.mrb[5].mxu1 }
 0x16d   : > { %v415_v54 = vmax.f32 %v355_v52, 0.0  ;;  %v423_v55 = vmax.f32 %v375_v53, 0.0  ;;  %v357_v56 = vpop.f32.mrb[14].mxu0  ;;  %v377_v57 = vpop.f32.mrb[6].mxu1 }
 0x16e   : > { %446 = vst [vmem:[%s777_s6 + $0x60] sm:$0xff] %v414_v50  ;;  %454 = vst [vmem:[%s777_s6 + $0xa0] sm:$0xff] %v422_v51  ;;  %v416_v58 = vmax.f32 %v357_v56, 0.0  ;;  %v424_v59 = vmax.f32 %v377_v57, 0.0  ;;  %v359_v60 = vpop.f32.mrb[15].mxu0  ;;  %v379_v61 = vpop.f32.mrb[7].mxu1 }
 0x16f   : > { %447 = vst [vmem:[%s777_s6 + $0x68] sm:$0xff] %v415_v54  ;;  %455 = vst [vmem:[%s777_s6 + $0xa8] sm:$0xff] %v423_v55  ;;  %v417_v62 = vmax.f32 %v359_v60, 0.0  ;;  %v425_v63 = vmax.f32 %v379_v61, 0.0 }
 0x170   : > { %448 = vst [vmem:[%s777_s6 + $0x70] sm:$0xff] %v416_v58  ;;  %456 = vst [vmem:[%s777_s6 + $0xb0] sm:$0xff] %v424_v59 }
 0x171   : > { %449 = vst [vmem:[%s777_s6 + $0x78] sm:$0xff] %v417_v62  ;;  %457 = vst [vmem:[%s777_s6 + $0xb8] sm:$0xff] %v425_v63 }
 0x173   : > { %v383_v0 = vpop.f32.mrb[8].mxu1 }
 0x174   : > { %v426_v1 = vmax.f32 %v383_v0, 0.0  ;;  %v385_v2 = vpop.f32.mrb[9].mxu1 }
 0x175   : > { %v427_v3 = vmax.f32 %v385_v2, 0.0  ;;  %v387_v4 = vpop.f32.mrb[10].mxu1 }
 0x176   : > { %458 = vst [vmem:[%s777_s6 + $0xc0] sm:$0xff] %v426_v1  ;;  %v428_v5 = vmax.f32 %v387_v4, 0.0  ;;  %v389_v6 = vpop.f32.mrb[11].mxu1 }
 0x177   : > { %459 = vst [vmem:[%s777_s6 + $0xc8] sm:$0xff] %v427_v3  ;;  %v429_v7 = vmax.f32 %v389_v6, 0.0 }
 0x178   : > { %460 = vst [vmem:[%s777_s6 + $0xd0] sm:$0xff] %v428_v5 }
 0x179   : > { %461 = vst [vmem:[%s777_s6 + $0xd8] sm:$0xff] %v429_v7 }
 0x17b   : > { %v393_v8 = vpop.f32.mrb[12].mxu1 }
 0x17c   : > { %v430_v9 = vmax.f32 %v393_v8, 0.0  ;;  %v395_v10 = vpop.f32.mrb[13].mxu1 }
 0x17d   : > { %v431_v11 = vmax.f32 %v395_v10, 0.0  ;;  %v397_v12 = vpop.f32.mrb[14].mxu1 }
 0x17e   : > { %462 = vst [vmem:[%s777_s6 + $0xe0] sm:$0xff] %v430_v9  ;;  %v432_v13 = vmax.f32 %v397_v12, 0.0  ;;  %v399_v14 = vpop.f32.mrb[15].mxu1 }
 0x17f   : > { %463 = vst [vmem:[%s777_s6 + $0xe8] sm:$0xff] %v431_v11  ;;  %v433_v15 = vmax.f32 %v399_v14, 0.0 }
 0x180   : > { %464 = vst [vmem:[%s777_s6 + $0xf0] sm:$0xff] %v432_v13 }
 0x181   : > { %465 = vst [vmem:[%s777_s6 + $0xf8] sm:$0xff] %v433_v15 }
 0x182 PF: > { %s12_s13 = sadd.s32 1, %s702_s13   ;;  %s829_s9 = smov %s694_s11 }
 0x183   : > { %p9_p8 = scmp.ge.s32.totalorder %s12_s13, 6   ;;  %s830_s10 = smov %s698_s12 }
 0x184   : > { %s831_s11 = smov %s834_s14  ;;  %s832_s12 = smov %s838_s15 }
 0x185   :  { %11 = sbr.rel (!%p9_p8) target bundleno = 3 (0x3), region = 61 }

</bundles_post_ra>
